<compile_context>
chip_gen: v7x
topology: tpu7x:2x2x1
jax: 0.10.0
libtpu: 0.0.40
codegen_flags: <defaults>
</compile_context>

<pallas_src>
import math

import jax
import jax.numpy as jnp
from jax import lax
from jax.experimental import pallas as pl
from jax.experimental.pallas import tpu as pltpu


# ---------------------------------------------------------------------------
# Pallas kernel
# ---------------------------------------------------------------------------
def _make_kernel(H0, H1, C_pad, eps=1e-5):
    def kernel(p_ref, wc_ref, w1_ref, w2_ref, vec_ref, o_ref):
        # packed parameter slab (all f32):
        #   row 0: conv bias   (H0)      row 3: fc1 bias (H1)
        #   row 1: LN1 gamma   (H0)      row 4: LN2 gamma (H1)
        #   row 2: LN1 beta    (H0)      row 5: LN2 beta  (H1)
        #   row 6: fc2 bias    (C_pad, zero-padded)
        bc  = vec_ref[0:1, :H0]
        g1  = vec_ref[1:2, :H0]
        be1 = vec_ref[2:3, :H0]
        b1  = vec_ref[3:4, :H1]
        g2  = vec_ref[4:5, :H1]
        be2 = vec_ref[5:6, :H1]
        b2  = vec_ref[6:7, :C_pad]

        def layer_norm(h, g, b):
            # PyTorch LayerNorm: biased variance, eps inside rsqrt, f32 stats.
            mu = jnp.mean(h, axis=-1, keepdims=True)
            c = h - mu
            var = jnp.mean(c * c, axis=-1, keepdims=True)
            return c * lax.rsqrt(var + eps) * g + b

        # conv-as-matmul (patch projection), f32 accumulation on the MXU
        h = jnp.dot(p_ref[...], wc_ref[...],
                    preferred_element_type=jnp.float32) + bc
        h = jnp.maximum(layer_norm(h, g1, be1), 0.0)           # LN1 + ReLU

        h = jnp.dot(h.astype(w1_ref.dtype), w1_ref[...],       # fc1
                    preferred_element_type=jnp.float32) + b1
        h = jnp.maximum(layer_norm(h, g2, be2), 0.0)           # LN2 + ReLU

        # fc2 with lane-padded (128-wide) output -> unmasked full-lane stores
        o_ref[...] = (jnp.dot(h.astype(w2_ref.dtype), w2_ref[...],
                              preferred_element_type=jnp.float32)
                      + b2).astype(o_ref.dtype)

    return kernel


# ---------------------------------------------------------------------------
# Parameter preparation (done once, host-side; PyTorch layouts in, kernel
# layouts out: reordered conv weight, transposed linears, lane-padded fc2,
# packed bias/LN slab)
# ---------------------------------------------------------------------------
def prepare_kernel_params(torch_params, K):
    wc, bc, g1, be1, w1, b1, g2, be2, w2, b2 = torch_params
    Kh, Kw = K
    H0, Q = wc.shape[0], wc.shape[1]
    H1 = w1.shape[0]
    C_out = w2.shape[0]
    C_pad = ((max(C_out, 128) + 127) // 128) * 128       # lane-dense out width
    L = ((max(H0, H1, C_pad) + 127) // 128) * 128        # slab lane width

    # Conv2d weight (H0, Q, Kh, Kw) -> (P, H0) with patch flatten order (kh,kw,q)
    wc_k = jnp.transpose(wc, (2, 3, 1, 0)).reshape(Kh * Kw * Q, H0)
    w1_k = w1.T                                                      # (H0, H1)
    w2_k = jnp.zeros((H1, C_pad), jnp.float32).at[:, :C_out].set(w2.T)

    def _row(v):
        return jnp.zeros((L,), jnp.float32).at[: v.shape[0]].set(v)

    b2_pad = jnp.zeros((C_pad,), jnp.float32).at[:C_out].set(b2)
    vec = jnp.stack([_row(bc), _row(g1), _row(be1),
                     _row(b1), _row(g2), _row(be2),
                     _row(b2_pad),
                     jnp.zeros((L,), jnp.float32)])                  # (8, L)

    return dict(wc=wc_k, w1=w1_k, w2=w2_k, vec=vec,
                H0=H0, H1=H1, C_out=C_out, C_pad=C_pad)


# ---------------------------------------------------------------------------
# Pallas forward
# ---------------------------------------------------------------------------
def patchwise_mlp_norm(x, kparams, K=(4, 4), S=(4, 4), tile_m=512,
                       compute_dtype=jnp.float32):
    """x: (B, T, H, W, Q) float32 -> (B, T, H', W', C_out) float32."""
    assert tuple(K) == tuple(S), "patchwise lowering assumes kernel_size == stride"
    B, T, H, W, Q = x.shape
    Kh, Kw = K
    Hp, Wp = H // Kh, W // Kw
    N = B * T * Hp * Wp
    P = Kh * Kw * Q

    H0, H1 = kparams["H0"], kparams["H1"]
    C_out, C_pad = kparams["C_out"], kparams["C_pad"]

    # Patch extraction: free reshape + ONE transpose (swap Kh <-> Wp).
    # Flatten order (kh, kw, q) matches the pre-reordered conv weight.
    xt = x.reshape(B, T, Hp, Kh, Wp, Kw, Q)
    xt = jnp.transpose(xt, (0, 1, 2, 4, 3, 5, 6))
    patches = xt.reshape(N, P).astype(compute_dtype)

    wc = kparams["wc"].astype(compute_dtype)
    w1 = kparams["w1"].astype(compute_dtype)
    w2 = kparams["w2"].astype(compute_dtype)
    vec = kparams["vec"]                       # keep biases / LN params in f32

    # Large row tiles (clamped to N, multiple of 8); ragged tail handled by
    # Pallas boundary masking via a cdiv grid (rows are fully independent).
    tile_m = max(8, min(int(tile_m), ((N + 7) // 8) * 8))
    tile_m = (tile_m // 8) * 8
    grid = (pl.cdiv(N, tile_m),)

    kernel = _make_kernel(H0, H1, C_pad)

    def row_map(i):
        return (i, 0)

    def whole(i):
        return (0, 0)

    out = pl.pallas_call(
        kernel,
        out_shape=jax.ShapeDtypeStruct((N, C_pad), jnp.float32),
        grid_spec=pltpu.PrefetchScalarGridSpec(
            num_scalar_prefetch=0,
            grid=grid,
            in_specs=[
                pl.BlockSpec((tile_m, P), row_map),   # patches (row-tiled)
                pl.BlockSpec(wc.shape, whole),        # conv weight (P, H0)
                pl.BlockSpec(w1.shape, whole),        # fc1 weight (H0, H1)
                pl.BlockSpec(w2.shape, whole),        # fc2 weight (H1, C_pad)
                pl.BlockSpec(vec.shape, whole),       # packed bias/LN slab
            ],
            out_specs=pl.BlockSpec((tile_m, C_pad), row_map),
        ),
        compiler_params=pltpu.CompilerParams(
            dimension_semantics=("parallel",)),
    )(patches, wc, w1, w2, vec)

    # drop lane padding, restore (B, T, H', W', C_out)
    return out[:, :C_out].reshape(B, T, Hp, Wp, C_out)


# ---------------------------------------------------------------------------
# Deterministic synthetic parameters (PyTorch layouts) + pure-JAX reference
# ---------------------------------------------------------------------------
def init_torch_params(key, input_dim, output_dim, hidden_dims=(32, 32), K=(4, 4)):
    Kh, Kw = K
    H0, H1 = hidden_dims
    ks = jax.random.split(key, 6)
    fan_c = input_dim * Kh * Kw
    wc = jax.random.normal(ks[0], (H0, input_dim, Kh, Kw), jnp.float32) / math.sqrt(fan_c)
    bc = jax.random.normal(ks[1], (H0,), jnp.float32) * 0.1
    g1 = jnp.ones((H0,), jnp.float32)
    be1 = jnp.zeros((H0,), jnp.float32)
    w1 = jax.random.normal(ks[2], (H1, H0), jnp.float32) / math.sqrt(H0)
    b1 = jax.random.normal(ks[3], (H1,), jnp.float32) * 0.1
    g2 = jnp.ones((H1,), jnp.float32)
    be2 = jnp.zeros((H1,), jnp.float32)
    w2 = jax.random.normal(ks[4], (output_dim, H1), jnp.float32) / math.sqrt(H1)
    b2 = jax.random.normal(ks[5], (output_dim,), jnp.float32) * 0.1
    return (wc, bc, g1, be1, w1, b1, g2, be2, w2, b2)


def reference_forward(x, torch_params, K=(4, 4), S=(4, 4)):
    """Pure-JAX mirror of the PyTorch forward (real conv), for validation."""
    wc, bc, g1, be1, w1, b1, g2, be2, w2, b2 = torch_params
    B, T, H, W, Q = x.shape
    eps = 1e-5

    xc = jnp.transpose(x, (0, 1, 4, 2, 3)).reshape(B * T, Q, H, W)
    out = lax.conv_general_dilated(
        xc, wc, window_strides=tuple(S), padding="VALID",
        dimension_numbers=("NCHW", "OIHW", "NCHW"))
    out = out + bc.reshape(1, -1, 1, 1)
    out = jnp.transpose(out, (0, 2, 3, 1))            # (B*T, H', W', H0)

    def ln(h, g, b):
        mu = jnp.mean(h, -1, keepdims=True)
        var = jnp.mean((h - mu) ** 2, -1, keepdims=True)
        return (h - mu) / jnp.sqrt(var + eps) * g + b

    h = jnp.maximum(ln(out, g1, be1), 0.0)
    h = h @ w1.T + b1
    h = jnp.maximum(ln(h, g2, be2), 0.0)
    h = h @ w2.T + b2
    _, Hp, Wp, C = h.shape
    return h.reshape(B, T, Hp, Wp, C)


# ---------------------------------------------------------------------------
if __name__ == "__main__":
    # small shapes consistent with the module: x (B, T, H, W, Q)
    B, T, H, W, Q = 2, 3, 16, 16, 4
    hidden_dims = (32, 32)
    output_dim = 8
    K = S = (4, 4)

    key = jax.random.PRNGKey(0)
    kx, kp = jax.random.split(key)
    x = jax.random.normal(kx, (B, T, H, W, Q), jnp.float32)

    torch_params = init_torch_params(kp, Q, output_dim, hidden_dims, K)
    kparams = prepare_kernel_params(torch_params, K)
    ref = reference_forward(x, torch_params, K, S)

    # f32 path (tight tolerance vs. real-conv reference)
    out = patchwise_mlp_norm(x, kparams, K=K, S=S, tile_m=512,
                             compute_dtype=jnp.float32)
    out = jax.block_until_ready(out)
    assert out.shape == (B, T, H // 4, W // 4, output_dim), out.shape
    assert jnp.allclose(out, ref, atol=1e-4, rtol=1e-4), "f32 mismatch vs reference"

    # bf16 weights/patches (HBM-traffic saver on v6e/v7x), f32 accumulation/LN
    out_bf16 = patchwise_mlp_norm(x, kparams, K=K, S=S, tile_m=512,
                                  compute_dtype=jnp.bfloat16)
    out_bf16 = jax.block_until_ready(out_bf16)
    assert jnp.allclose(out_bf16, ref, atol=2e-1, rtol=1e-1), "bf16 mismatch vs reference"

    print("KERNEL_OK")
</pallas_src>

<mosaic_0001>
module attributes {stable_mosaic.version = 11 : i64} {
  func.func @kernel(%arg0: i32, %arg1: memref<96x64xf32, #tpu.memory_space<vmem>>, %arg2: memref<64x32xf32, #tpu.memory_space<vmem>>, %arg3: memref<32x32xf32, #tpu.memory_space<vmem>>, %arg4: memref<32x128xf32, #tpu.memory_space<vmem>>, %arg5: memref<8x128xf32, #tpu.memory_space<vmem>>, %arg6: memref<96x128xf32, #tpu.memory_space<vmem>>) attributes {dimension_semantics = [#tpu.dimension_semantics<parallel>], iteration_bounds = array<i64: 1>, scalar_prefetch = 0 : i64, scratch_operands = 0 : i64, tpu.core_type = #tpu.core_type<tc>, window_params = [{transform_indices = @transform_0, window_bounds = array<i64: 96, 64>}, {pipeline_mode = #tpu.pipeline_mode<synchronous>, transform_indices = @transform_1, window_bounds = array<i64: 64, 32>}, {pipeline_mode = #tpu.pipeline_mode<synchronous>, transform_indices = @transform_2, window_bounds = array<i64: 32, 32>}, {pipeline_mode = #tpu.pipeline_mode<synchronous>, transform_indices = @transform_3, window_bounds = array<i64: 32, 128>}, {pipeline_mode = #tpu.pipeline_mode<synchronous>, transform_indices = @transform_4, window_bounds = array<i64: 8, 128>}, {transform_indices = @transform_5, window_bounds = array<i64: 96, 128>}]} {
    %c0 = arith.constant 0 : index
    %c0_0 = arith.constant 0 : index
    %0 = vector.load %arg5[%c0, %c0_0] : memref<8x128xf32, #tpu.memory_space<vmem>>, vector<1x32xf32>
    %c1 = arith.constant 1 : index
    %c0_1 = arith.constant 0 : index
    %1 = vector.load %arg5[%c1, %c0_1] : memref<8x128xf32, #tpu.memory_space<vmem>>, vector<1x32xf32>
    %c2 = arith.constant 2 : index
    %c0_2 = arith.constant 0 : index
    %2 = vector.load %arg5[%c2, %c0_2] : memref<8x128xf32, #tpu.memory_space<vmem>>, vector<1x32xf32>
    %c3 = arith.constant 3 : index
    %c0_3 = arith.constant 0 : index
    %3 = vector.load %arg5[%c3, %c0_3] : memref<8x128xf32, #tpu.memory_space<vmem>>, vector<1x32xf32>
    %c4 = arith.constant 4 : index
    %c0_4 = arith.constant 0 : index
    %4 = vector.load %arg5[%c4, %c0_4] : memref<8x128xf32, #tpu.memory_space<vmem>>, vector<1x32xf32>
    %c5 = arith.constant 5 : index
    %c0_5 = arith.constant 0 : index
    %5 = vector.load %arg5[%c5, %c0_5] : memref<8x128xf32, #tpu.memory_space<vmem>>, vector<1x32xf32>
    %c6 = arith.constant 6 : index
    %c0_6 = arith.constant 0 : index
    %6 = vector.load %arg5[%c6, %c0_6] : memref<8x128xf32, #tpu.memory_space<vmem>>, vector<1x128xf32>
    %c0_7 = arith.constant 0 : index
    %c0_8 = arith.constant 0 : index
    %7 = vector.load %arg1[%c0_7, %c0_8] : memref<96x64xf32, #tpu.memory_space<vmem>>, vector<96x64xf32>
    %c0_9 = arith.constant 0 : index
    %c0_10 = arith.constant 0 : index
    %8 = vector.load %arg2[%c0_9, %c0_10] : memref<64x32xf32, #tpu.memory_space<vmem>>, vector<64x32xf32>
    %cst = arith.constant dense<0.000000e+00> : vector<96x32xf32>
    %9 = tpu.matmul %7, %8, %cst {dimension_numbers = #tpu.dot_dimension_numbers<[1], [0], [0], [1], [0, 0, 1, 1], [], []>} : vector<96x64xf32>, vector<64x32xf32>, vector<96x32xf32> -> vector<96x32xf32>
    %10 = vector.broadcast %0 : vector<1x32xf32> to vector<96x32xf32>
    %11 = arith.addf %9, %10 : vector<96x32xf32>
    %cst_11 = arith.constant dense<0.000000e+00> : vector<96xf32>
    %12 = vector.multi_reduction <add>, %11, %cst_11 [1] : vector<96x32xf32> to vector<96xf32>
    %13 = vector.shape_cast %12 : vector<96xf32> to vector<96x1xf32>
    %cst_12 = arith.constant 3.200000e+01 : f32
    %14 = vector.broadcast %cst_12 : f32 to vector<96x1xf32>
    %15 = arith.divf %13, %14 : vector<96x1xf32>
    %16 = vector.broadcast %15 : vector<96x1xf32> to vector<96x32xf32>
    %17 = arith.subf %11, %16 : vector<96x32xf32>
    %18 = arith.mulf %17, %17 : vector<96x32xf32>
    %cst_13 = arith.constant dense<0.000000e+00> : vector<96xf32>
    %19 = vector.multi_reduction <add>, %18, %cst_13 [1] : vector<96x32xf32> to vector<96xf32>
    %20 = vector.shape_cast %19 : vector<96xf32> to vector<96x1xf32>
    %cst_14 = arith.constant 3.200000e+01 : f32
    %21 = vector.broadcast %cst_14 : f32 to vector<96x1xf32>
    %22 = arith.divf %20, %21 : vector<96x1xf32>
    %cst_15 = arith.constant 9.99999974E-6 : f32
    %23 = vector.broadcast %cst_15 : f32 to vector<96x1xf32>
    %24 = arith.addf %22, %23 : vector<96x1xf32>
    %25 = math.rsqrt %24 : vector<96x1xf32>
    %26 = vector.broadcast %25 : vector<96x1xf32> to vector<96x32xf32>
    %27 = arith.mulf %17, %26 : vector<96x32xf32>
    %28 = vector.broadcast %1 : vector<1x32xf32> to vector<96x32xf32>
    %29 = arith.mulf %27, %28 : vector<96x32xf32>
    %30 = vector.broadcast %2 : vector<1x32xf32> to vector<96x32xf32>
    %31 = arith.addf %29, %30 : vector<96x32xf32>
    %cst_16 = arith.constant 0.000000e+00 : f32
    %32 = vector.broadcast %cst_16 : f32 to vector<96x32xf32>
    %33 = arith.maximumf %31, %32 : vector<96x32xf32>
    %c0_17 = arith.constant 0 : index
    %c0_18 = arith.constant 0 : index
    %34 = vector.load %arg3[%c0_17, %c0_18] : memref<32x32xf32, #tpu.memory_space<vmem>>, vector<32x32xf32>
    %cst_19 = arith.constant dense<0.000000e+00> : vector<96x32xf32>
    %35 = tpu.matmul %33, %34, %cst_19 {dimension_numbers = #tpu.dot_dimension_numbers<[1], [0], [0], [1], [0, 0, 1, 1], [], []>} : vector<96x32xf32>, vector<32x32xf32>, vector<96x32xf32> -> vector<96x32xf32>
    %36 = vector.broadcast %3 : vector<1x32xf32> to vector<96x32xf32>
    %37 = arith.addf %35, %36 : vector<96x32xf32>
    %cst_20 = arith.constant dense<0.000000e+00> : vector<96xf32>
    %38 = vector.multi_reduction <add>, %37, %cst_20 [1] : vector<96x32xf32> to vector<96xf32>
    %39 = vector.shape_cast %38 : vector<96xf32> to vector<96x1xf32>
    %cst_21 = arith.constant 3.200000e+01 : f32
    %40 = vector.broadcast %cst_21 : f32 to vector<96x1xf32>
    %41 = arith.divf %39, %40 : vector<96x1xf32>
    %42 = vector.broadcast %41 : vector<96x1xf32> to vector<96x32xf32>
    %43 = arith.subf %37, %42 : vector<96x32xf32>
    %44 = arith.mulf %43, %43 : vector<96x32xf32>
    %cst_22 = arith.constant dense<0.000000e+00> : vector<96xf32>
    %45 = vector.multi_reduction <add>, %44, %cst_22 [1] : vector<96x32xf32> to vector<96xf32>
    %46 = vector.shape_cast %45 : vector<96xf32> to vector<96x1xf32>
    %cst_23 = arith.constant 3.200000e+01 : f32
    %47 = vector.broadcast %cst_23 : f32 to vector<96x1xf32>
    %48 = arith.divf %46, %47 : vector<96x1xf32>
    %cst_24 = arith.constant 9.99999974E-6 : f32
    %49 = vector.broadcast %cst_24 : f32 to vector<96x1xf32>
    %50 = arith.addf %48, %49 : vector<96x1xf32>
    %51 = math.rsqrt %50 : vector<96x1xf32>
    %52 = vector.broadcast %51 : vector<96x1xf32> to vector<96x32xf32>
    %53 = arith.mulf %43, %52 : vector<96x32xf32>
    %54 = vector.broadcast %4 : vector<1x32xf32> to vector<96x32xf32>
    %55 = arith.mulf %53, %54 : vector<96x32xf32>
    %56 = vector.broadcast %5 : vector<1x32xf32> to vector<96x32xf32>
    %57 = arith.addf %55, %56 : vector<96x32xf32>
    %cst_25 = arith.constant 0.000000e+00 : f32
    %58 = vector.broadcast %cst_25 : f32 to vector<96x32xf32>
    %59 = arith.maximumf %57, %58 : vector<96x32xf32>
    %c0_26 = arith.constant 0 : index
    %c0_27 = arith.constant 0 : index
    %60 = vector.load %arg4[%c0_26, %c0_27] : memref<32x128xf32, #tpu.memory_space<vmem>>, vector<32x128xf32>
    %cst_28 = arith.constant dense<0.000000e+00> : vector<96x128xf32>
    %61 = tpu.matmul %59, %60, %cst_28 {dimension_numbers = #tpu.dot_dimension_numbers<[1], [0], [0], [1], [0, 0, 1, 1], [], []>} : vector<96x32xf32>, vector<32x128xf32>, vector<96x128xf32> -> vector<96x128xf32>
    %62 = vector.broadcast %6 : vector<1x128xf32> to vector<96x128xf32>
    %63 = arith.addf %61, %62 : vector<96x128xf32>
    %c0_29 = arith.constant 0 : index
    %c0_30 = arith.constant 0 : index
    %64 = vector.load %arg6[%c0_29, %c0_30] : memref<96x128xf32, #tpu.memory_space<vmem>>, vector<96x128xf32>
    tpu.vector_store %arg6[%c0_29, %c0_30], %63 {strides = array<i32>} : memref<96x128xf32, #tpu.memory_space<vmem>>, vector<96x128xf32>,
    return
  }
  func.func @transform_0(%arg0: i32) -> (i32, i32) {
    %c0_i32 = arith.constant 0 : i32
    %c0_i32_0 = arith.constant 0 : i32
    return %arg0, %c0_i32 : i32, i32
  }
  func.func @transform_1(%arg0: i32) -> (i32, i32) {
    %c0_i32 = arith.constant 0 : i32
    %c0_i32_0 = arith.constant 0 : i32
    %c0_i32_1 = arith.constant 0 : i32
    return %c0_i32, %c0_i32_0 : i32, i32
  }
  func.func @transform_2(%arg0: i32) -> (i32, i32) {
    %c0_i32 = arith.constant 0 : i32
    %c0_i32_0 = arith.constant 0 : i32
    %c0_i32_1 = arith.constant 0 : i32
    return %c0_i32, %c0_i32_0 : i32, i32
  }
  func.func @transform_3(%arg0: i32) -> (i32, i32) {
    %c0_i32 = arith.constant 0 : i32
    %c0_i32_0 = arith.constant 0 : i32
    %c0_i32_1 = arith.constant 0 : i32
    return %c0_i32, %c0_i32_0 : i32, i32
  }
  func.func @transform_4(%arg0: i32) -> (i32, i32) {
    %c0_i32 = arith.constant 0 : i32
    %c0_i32_0 = arith.constant 0 : i32
    %c0_i32_1 = arith.constant 0 : i32
    return %c0_i32, %c0_i32_0 : i32, i32
  }
  func.func @transform_5(%arg0: i32) -> (i32, i32) {
    %c0_i32 = arith.constant 0 : i32
    %c0_i32_0 = arith.constant 0 : i32
    return %arg0, %c0_i32 : i32, i32
  }
}

</mosaic_0001>

<bundles_post_ra>
// kernel: tpu_custom_call.1
= control target key start
LH: loop header
LB: loop body
LE: loop exit
PB: predicated region body
PF: predicated region fallthrough
CT: control target
= control target key end

     0   :  { %vm52_vm0 = vcmask 523264   ;;  %s1716_s0 = inlined_call_operand.vmem [shape: f32[96,64], index: 0, kind: input, shape index: {}]   ;;  %s1717_s1 = inlined_call_operand.vmem [shape: f32[64,32], index: 1, kind: input, shape index: {}]   ;;  %s1718_s2 = inlined_call_operand.vmem [shape: f32[32,32], index: 2, kind: input, shape index: {}]   ;;  %s1719_s3 = inlined_call_operand.vmem [shape: f32[32,128], index: 3, kind: input, shape index: {}]   ;;  %s1720_s4 = inlined_call_operand.vmem [shape: f32[8,128], index: 4, kind: input, shape index: {}]   ;;  %s1721_s5 = inlined_call_operand.hbm [shape: f32[96,128], index: 5, kind: output, shape index: {}]  }
   0x1   :  { %v40_v0 = vld [vmem:[%s1717_s1] sm:$0xff]  ;;  %v41_v1 = vld [vmem:[%s1717_s1 + $0x8] sm:$0xff]  ;;  %v42_v2 = vld [vmem:[%s1717_s1 + $0x10] sm:$0xff] }
   0x2   :  { %v1163_v3 = vpack.c.bf16 %v41_v1, %v40_v0  ;;  %v43_v4 = vld [vmem:[%s1717_s1 + $0x18] sm:$0xff]  ;;  %v44_v6 = vld [vmem:[%s1717_s1 + $0x20] sm:$0xff]  ;;  %v45_v7 = vld [vmem:[%s1717_s1 + $0x28] sm:$0xff] }
   0x3   :  { %v1167_v5 = vpack.c.bf16 %v43_v4, %v42_v2  ;;  %v28_v8 = vld [vmem:[%s1716_s0] sm:$0xff]  ;;  %v1171_v9 = vpack.c.bf16 %v45_v7, %v44_v6  ;;  %v46_v10 = vld [vmem:[%s1717_s1 + $0x30] sm:$0xff]  ;;  %v47_v11 = vld [vmem:[%s1717_s1 + $0x38] sm:$0xff] }
   0x4   :  { %1164 = vmatprep.subr.bf16.mxu0 %v1163_v3  ;;  %1093 = vmatprep.mubr.msk.f32.mxu0 %vm52_vm0, %v28_v8 }
   0x5   :  { %1166 = vmatpush3.bf16.msra.mxu0 %v1163_v3 }
   0x6   :  { %1168 = vmatprep.subr.bf16.mxu0 %v1167_v5 }
   0x7   :  { %10 = vsyncpa [#allocation3], 0  ;;  %v1175_v12 = vpack.c.bf16 %v47_v11, %v46_v10  ;;  %v29_v13 = vld [vmem:[%s1716_s0 + $0x8] sm:$0xff]  ;;  %v30_v14 = vld [vmem:[%s1716_s0 + $0x10] sm:$0xff]  ;;  %vm214_vm1 = vcmask 261120  }
   0x8   :  { %v31_v15 = vld [vmem:[%s1716_s0 + $0x18] sm:$0xff]  ;;  %v32_v16 = vld [vmem:[%s1716_s0 + $0x20] sm:$0xff]  ;;  %v33_v17 = vld [vmem:[%s1716_s0 + $0x28] sm:$0xff] }
   0x9   :  { %1170 = vmatpush3.bf16.msra.mxu0 %v1167_v5  ;;  %v34_v18 = vld [vmem:[%s1716_s0 + $0x30] sm:$0xff]  ;;  %v35_v19 = vld [vmem:[%s1716_s0 + $0x38] sm:$0xff]  ;;  %v36_v20 = vld [vmem:[%s1716_s0 + $0x40] sm:$0xff] }
   0xa   :  { %1172 = vmatprep.subr.bf16.mxu0 %v1171_v9  ;;  %v37_v21 = vld [vmem:[%s1716_s0 + $0x48] sm:$0xff]  ;;  %v38_v22 = vld [vmem:[%s1716_s0 + $0x50] sm:$0xff]  ;;  %v39_v23 = vld [vmem:[%s1716_s0 + $0x58] sm:$0xff] }
   0xb   :  { %v982_v24 = vld [vmem:[%s1720_s4] ss:$0 sm:$0xff] }
   0xd   :  { %1174 = vmatpush3.bf16.msra.mxu0 %v1171_v9 }
   0xe   :  { %1176 = vmatprep.subr.bf16.mxu0 %v1175_v12 }
  0x11   :  { %1178 = vmatpush3.bf16.msra.mxu0 %v1175_v12 }
  0x14   :  { %1094 = vmatmul.mubr.msk.f32.vlgmr.msra.gmra.mrb[0].mxu0 %vm52_vm0, %v29_v13 }
  0x15   :  { %1096 = vmatprep.mubr.msk.f32.mxu0 %vm52_vm0, %v30_v14 }
  0x18   :  { %1097 = vmatmul.mubr.msk.f32.gmra.mrb[2].mxu0 %vm52_vm0, %v31_v15 }
  0x19   :  { %1099 = vmatprep.mubr.msk.f32.mxu0 %vm52_vm0, %v32_v16 }
  0x1c   :  { %1100 = vmatmul.mubr.msk.f32.gmra.mrb[4].mxu0 %vm52_vm0, %v33_v17 }
  0x1d   :  { %1102 = vmatprep.mubr.msk.f32.mxu0 %vm52_vm0, %v34_v18 }
  0x20   :  { %1103 = vmatmul.mubr.msk.f32.gmra.mrb[6].mxu0 %vm52_vm0, %v35_v19 }
  0x21   :  { %1105 = vmatprep.mubr.msk.f32.mxu0 %vm52_vm0, %v36_v20 }
  0x24   :  { %1106 = vmatmul.mubr.msk.f32.gmra.mrb[8].mxu0 %vm52_vm0, %v37_v21 }
  0x25   :  { %1108 = vmatprep.mubr.msk.f32.mxu0 %vm52_vm0, %v38_v22 }
  0x28   :  { %1109 = vmatmul.mubr.msk.f32.gmra.mrb[10].mxu0 %vm52_vm0, %v39_v23 }
  0xe7   :  { %v1095_v25 = vpop.f32.mrb[0].mxu0 }
  0xe8   :  { %v155_v26 = vpop.f32.mrb[1].mxu0  ;;  %v161_v28 = vadd.f32 %v1095_v25, %v982_v24 }
  0xe9   :  { %v156_v27 = vadd.f32 %v982_v24, %v155_v26 }
  0xea   :  { %v218_v36 = vsel %vm214_vm1, %v161_v28, 0.0 }
  0xeb   :  { %v1098_v29 = vpop.f32.mrb[2].mxu0  ;;  %v215_v30 = vsel %vm214_vm1, %v156_v27, 0.0 }
  0xec   :  { %v165_v31 = vpop.f32.mrb[3].mxu0  ;;  %216 = vadd.xlane.f32.xlu0 %v215_v30  ;;  %v171_v33 = vadd.f32 %v1098_v29, %v982_v24 }
  0xed   :  { %v166_v32 = vadd.f32 %v982_v24, %v165_v31 }
  0xee   :  { %v224_v41 = vsel %vm214_vm1, %v171_v33, 0.0 }
  0xef   :  { %v1101_v34 = vpop.f32.mrb[4].mxu0  ;;  %v221_v35 = vsel %vm214_vm1, %v166_v32, 0.0 }
  0xf0   :  { %v175_v37 = vpop.f32.mrb[5].mxu0  ;;  %222 = vadd.xlane.f32.xlu1 %v221_v35  ;;  %219 = vadd.xlane.f32.xlu0 %v218_v36  ;;  %v181_v39 = vadd.f32 %v1101_v34, %v982_v24 }
  0xf1   :  { %v176_v38 = vadd.f32 %v982_v24, %v175_v37 }
  0xf2   :  { %v230_v47 = vsel %vm214_vm1, %v181_v39, 0.0 }
  0xf3   :  { %v1104_v40 = vpop.f32.mrb[6].mxu0  ;;  %v227_v42 = vsel %vm214_vm1, %v176_v38, 0.0 }
  0xf4   :  { %v185_v43 = vpop.f32.mrb[7].mxu0  ;;  %225 = vadd.xlane.f32.xlu1 %v224_v41  ;;  %228 = vadd.xlane.f32.xlu0 %v227_v42  ;;  %v1387_v45 = vadd.f32 %v1104_v40, %v982_v24 }
  0xf5   :  { %v186_v44 = vadd.f32 %v982_v24, %v185_v43 }
  0xf6   :  { %v236_v53 = vsel %vm214_vm1, %v1387_v45, 0.0 }
  0xf7   :  { %v1107_v46 = vpop.f32.mrb[8].mxu0  ;;  %v233_v48 = vsel %vm214_vm1, %v186_v44, 0.0 }
  0xf8   :  { %v195_v49 = vpop.f32.mrb[9].mxu0  ;;  %231 = vadd.xlane.f32.xlu1 %v230_v47  ;;  %234 = vadd.xlane.f32.xlu0 %v233_v48  ;;  %v1391_v51 = vadd.f32 %v1107_v46, %v982_v24 }
  0xf9   :  { %v196_v50 = vadd.f32 %v982_v24, %v195_v49 }
  0xfa   :  { %v242_v58 = vsel %vm214_vm1, %v1391_v51, 0.0 }
  0xfb   :  { %v1110_v52 = vpop.f32.mrb[10].mxu0  ;;  %v239_v54 = vsel %vm214_vm1, %v196_v50, 0.0 }
  0xfc   :  { %v205_v55 = vpop.f32.mrb[11].mxu0  ;;  %237 = vadd.xlane.f32.xlu1 %v236_v53  ;;  %240 = vadd.xlane.f32.xlu0 %v239_v54  ;;  %v1398_v57 = vadd.f32 %v1110_v52, %v982_v24  ;;  %v417_v53 = vld [vmem:[%s1718_s2 + $0x8] sm:$0xff] }
  0xfd   :  { %v1396_v56 = vadd.f32 %v982_v24, %v205_v55 }
  0xfe   :  { %v248_v60 = vsel %vm214_vm1, %v1398_v57, 0.0 }
  0xff   :  { %v245_v59 = vsel %vm214_vm1, %v1396_v56, 0.0 }
 0x100   :  { %243 = vadd.xlane.f32.xlu1 %v242_v58  ;;  %246 = vadd.xlane.f32.xlu0 %v245_v59 }
 0x104   :  { %249 = vadd.xlane.f32.xlu1 %v248_v60 }
 0x179   :  { %v217_v61 = vpop.xlane.xlu0 %216 }
 0x17a   :  { %v252_v62 = vmul.f32 0.03125, %v217_v61  ;;  %v419_v61 = vld [vmem:[%s1718_s2 + $0x18] sm:$0xff] }
 0x17c   :  { %v1406_v63 = vsub.f32 %v156_v27, %v252_v62 }
 0x17d   :  { %v223_v0 = vpop.xlane.xlu1 %222  ;;  %v220_v1 = vpop.xlane.xlu0 %219 }
 0x17e   :  { %v254_v2 = vmul.f32 0.03125, %v223_v0  ;;  %v253_v3 = vmul.f32 0.03125, %v220_v1  ;;  %v276_v4 = vmul.f32 %v1406_v63, %v1406_v63 }
 0x180   :  { %v1410_v5 = vsub.f32 %v166_v32, %v254_v2  ;;  %v1412_v6 = vsub.f32 %v161_v28, %v253_v3  ;;  %v288_v7 = vsel %vm214_vm1, %v276_v4, 0.0 }
 0x181   :  { %v226_v8 = vpop.xlane.xlu1 %225  ;;  %289 = vadd.xlane.f32.xlu0 %v288_v7  ;;  %v229_v9 = vpop.xlane.xlu0 %228 }
 0x182   :  { %v255_v10 = vmul.f32 0.03125, %v226_v8  ;;  %v256_v11 = vmul.f32 0.03125, %v229_v9  ;;  %v278_v12 = vmul.f32 %v1410_v5, %v1410_v5  ;;  %v277_v13 = vmul.f32 %v1412_v6, %v1412_v6 }
 0x184   :  { %v1419_v14 = vsub.f32 %v171_v33, %v255_v10  ;;  %v1421_v15 = vsub.f32 %v176_v38, %v256_v11  ;;  %v294_v16 = vsel %vm214_vm1, %v278_v12, 0.0  ;;  %v291_v17 = vsel %vm214_vm1, %v277_v13, 0.0 }
 0x185   :  { %v232_v18 = vpop.xlane.xlu1 %231  ;;  %295 = vadd.xlane.f32.xlu0 %v294_v16  ;;  %292 = vadd.xlane.f32.xlu1 %v291_v17  ;;  %v235_v19 = vpop.xlane.xlu0 %234 }
 0x186   :  { %v257_v20 = vmul.f32 0.03125, %v232_v18  ;;  %v258_v21 = vmul.f32 0.03125, %v235_v19  ;;  %v279_v22 = vmul.f32 %v1419_v14, %v1419_v14  ;;  %v280_v23 = vmul.f32 %v1421_v15, %v1421_v15 }
 0x188   :  { %v1429_v24 = vsub.f32 %v181_v39, %v257_v20  ;;  %v1431_v25 = vsub.f32 %v186_v44, %v258_v21  ;;  %v297_v26 = vsel %vm214_vm1, %v279_v22, 0.0  ;;  %v300_v27 = vsel %vm214_vm1, %v280_v23, 0.0 }
 0x189   :  { %v238_v28 = vpop.xlane.xlu1 %237  ;;  %298 = vadd.xlane.f32.xlu1 %v297_v26  ;;  %301 = vadd.xlane.f32.xlu0 %v300_v27  ;;  %v241_v29 = vpop.xlane.xlu0 %240  ;;  %v1485_v26 = vld [vmem:[%s1720_s4 + $0x1] ss:$0 sm:$0xff] }
 0x18a   :  { %v259_v30 = vmul.f32 0.03125, %v238_v28  ;;  %v260_v31 = vmul.f32 0.03125, %v241_v29  ;;  %v281_v32 = vmul.f32 %v1429_v24, %v1429_v24  ;;  %v282_v33 = vmul.f32 %v1431_v25, %v1431_v25 }
 0x18c   :  { %v1440_v34 = vsub.f32 %v1387_v45, %v259_v30  ;;  %v1442_v35 = vsub.f32 %v196_v50, %v260_v31  ;;  %v303_v36 = vsel %vm214_vm1, %v281_v32, 0.0  ;;  %v306_v37 = vsel %vm214_vm1, %v282_v33, 0.0  ;;  %v1491_v32 = vld [vmem:[%s1720_s4 + $0x2] ss:$0 sm:$0xff] }
 0x18d   :  { %v244_v38 = vpop.xlane.xlu1 %243  ;;  %304 = vadd.xlane.f32.xlu1 %v303_v36  ;;  %307 = vadd.xlane.f32.xlu0 %v306_v37  ;;  %v247_v39 = vpop.xlane.xlu0 %246 }
 0x18e   :  { %v261_v40 = vmul.f32 0.03125, %v244_v38  ;;  %v262_v41 = vmul.f32 0.03125, %v247_v39  ;;  %v283_v42 = vmul.f32 %v1440_v34, %v1440_v34  ;;  %v284_v43 = vmul.f32 %v1442_v35, %v1442_v35 }
 0x190   :  { %v1451_v44 = vsub.f32 %v1391_v51, %v261_v40  ;;  %v1454_v45 = vsub.f32 %v1396_v56, %v262_v41  ;;  %v309_v46 = vsel %vm214_vm1, %v283_v42, 0.0  ;;  %v312_v47 = vsel %vm214_vm1, %v284_v43, 0.0  ;;  %v416_v51 = vld [vmem:[%s1718_s2] sm:$0xff] }
 0x191   :  { %v250_v48 = vpop.xlane.xlu1 %249  ;;  %310 = vadd.xlane.f32.xlu1 %v309_v46  ;;  %313 = vadd.xlane.f32.xlu0 %v312_v47  ;;  %v1179_v58 = vpack.c.bf16 %v417_v53, %v416_v51 }
 0x192   :  { %v263_v49 = vmul.f32 0.03125, %v250_v48  ;;  %v285_v50 = vmul.f32 %v1451_v44, %v1451_v44  ;;  %v286_v52 = vmul.f32 %v1454_v45, %v1454_v45 }
 0x193   :  { %1180 = vmatprep.subr.bf16.mxu0 %v1179_v58  ;;  %1195 = vmatprep.subr.bf16.mxu1 %v1179_v58 }
 0x194   :  { %v1469_v54 = vsub.f32 %v1398_v57, %v263_v49  ;;  %v315_v55 = vsel %vm214_vm1, %v285_v50, 0.0  ;;  %v318_v56 = vsel %vm214_vm1, %v286_v52, 0.0  ;;  %1182 = vmatpush3.bf16.msra.mxu0 %v1179_v58  ;;  %1197 = vmatpush3.bf16.msra.mxu1 %v1179_v58  ;;  %v418_v57 = vld [vmem:[%s1718_s2 + $0x10] sm:$0xff] }
 0x195   :  { %316 = vadd.xlane.f32.xlu1 %v315_v55  ;;  %319 = vadd.xlane.f32.xlu0 %v318_v56  ;;  %v1183_v62 = vpack.c.bf16 %v419_v61, %v418_v57 }
 0x196   :  { %v287_v59 = vmul.f32 %v1469_v54, %v1469_v54 }
 0x197   :  { %1184 = vmatprep.subr.bf16.mxu0 %v1183_v62  ;;  %1196 = vmatprep.subr.bf16.mxu1 %v1183_v62 }
 0x198   :  { %v321_v60 = vsel %vm214_vm1, %v287_v59, 0.0  ;;  %1186 = vmatpush3.bf16.msra.mxu0 %v1183_v62  ;;  %1198 = vmatpush3.bf16.msra.mxu1 %v1183_v62 }
 0x199   :  { %322 = vadd.xlane.f32.xlu1 %v321_v60 }
 0x20e   :  { %v290_v0 = vpop.xlane.xlu0 %289 }
 0x20f   :  { %v324_v1 = vmul.f32 0.03125, %v290_v0 }
 0x211   :  { %v336_v2 = vadd.f32 1e-05, %v324_v1 }
 0x212   :  { %v293_v3 = vpop.xlane.xlu1 %292  ;;  %v296_v4 = vpop.xlane.xlu0 %295 }
 0x213   :  { %1202 = vrsqrt.f32 %v336_v2  ;;  %v325_v7 = vmul.f32 0.03125, %v293_v3  ;;  %v326_v8 = vmul.f32 0.03125, %v296_v4 }
 0x215   :  { %v337_v9 = vadd.f32 1e-05, %v325_v7  ;;  %v338_v10 = vadd.f32 1e-05, %v326_v8 }
 0x216   :  { %v299_v11 = vpop.xlane.xlu1 %298  ;;  %v302_v12 = vpop.xlane.xlu0 %301 }
 0x217   :  { %1204 = vrsqrt.f32 %v337_v9  ;;  %v327_v13 = vmul.f32 0.03125, %v299_v11  ;;  %v328_v16 = vmul.f32 0.03125, %v302_v12 }
 0x218   :  { %1206 = vrsqrt.f32 %v338_v10 }
 0x219   :  { %v339_v17 = vadd.f32 1e-05, %v327_v13  ;;  %v340_v18 = vadd.f32 1e-05, %v328_v16 }
 0x21a   :  { %v305_v19 = vpop.xlane.xlu1 %304  ;;  %v308_v20 = vpop.xlane.xlu0 %307 }
 0x21b   :  { %1208 = vrsqrt.f32 %v339_v17  ;;  %v329_v21 = vmul.f32 0.03125, %v305_v19  ;;  %v330_v22 = vmul.f32 0.03125, %v308_v20 }
 0x21c   :  { %1210 = vrsqrt.f32 %v340_v18 }
 0x21d   :  { %v1203_v23 = vpop.eup %1202  ;;  %v341_v27 = vadd.f32 1e-05, %v329_v21  ;;  %v342_v28 = vadd.f32 1e-05, %v330_v22 }
 0x21e   :  { %v311_v29 = vpop.xlane.xlu1 %310  ;;  %v314_v30 = vpop.xlane.xlu0 %313  ;;  %v360_v31 = vmul.f32 %v1203_v23, %v1406_v63 }
 0x21f   :  { %1212 = vrsqrt.f32 %v341_v27  ;;  %v331_v33 = vmul.f32 0.03125, %v311_v29  ;;  %v332_v36 = vmul.f32 0.03125, %v314_v30 }
 0x220   :  { %1214 = vrsqrt.f32 %v342_v28  ;;  %v376_v37 = vmul.f32 %v1485_v26, %v360_v31 }
 0x221   :  { %v1205_v38 = vpop.eup %1204  ;;  %v343_v39 = vadd.f32 1e-05, %v331_v33  ;;  %v344_v40 = vadd.f32 1e-05, %v332_v36 }
 0x222   :  { %v1207_v41 = vpop.eup %1206  ;;  %v361_v42 = vmul.f32 %v1205_v38, %v1412_v6  ;;  %v317_v43 = vpop.xlane.xlu1 %316  ;;  %v392_v63 = vadd.f32 %v1491_v32, %v376_v37 }
 0x223   :  { %v320_v46 = vpop.xlane.xlu0 %319  ;;  %1216 = vrsqrt.f32 %v343_v39  ;;  %v333_v47 = vmul.f32 0.03125, %v317_v43  ;;  %v362_v49 = vmul.f32 %v1207_v41, %v1410_v5 }
 0x224   :  { %v334_v48 = vmul.f32 0.03125, %v320_v46  ;;  %v377_v50 = vmul.f32 %v1485_v26, %v361_v42  ;;  %1218 = vrsqrt.f32 %v344_v40  ;;  %v404_v52 = vmax.f32 %v392_v63, 0.0 }
 0x225   :  { %v1209_v51 = vpop.eup %1208  ;;  %v345_v53 = vadd.f32 1e-05, %v333_v47  ;;  %v378_v56 = vmul.f32 %v1485_v26, %v362_v49 }
 0x226   :  { %v346_v55 = vadd.f32 1e-05, %v334_v48  ;;  %v1211_v58 = vpop.eup %1210  ;;  %v393_v6 = vadd.f32 %v1491_v32, %v377_v50  ;;  %v323_v59 = vpop.xlane.xlu1 %322  ;;  %1119 = vmatprep.mubr.msk.f32.mxu0 %vm214_vm1, %v404_v52  ;;  %v363_v60 = vmul.f32 %v1209_v51, %v1419_v14 }
 0x227   :  { %1220 = vrsqrt.f32 %v345_v53  ;;  %v335_v57 = vmul.f32 0.03125, %v323_v59  ;;  %v394_v5 = vadd.f32 %v1491_v32, %v378_v56  ;;  %v364_v61 = vmul.f32 %v1211_v58, %v1421_v15 }
 0x228   :  { %v405_v62 = vmax.f32 %v393_v6, 0.0  ;;  %1222 = vrsqrt.f32 %v346_v55  ;;  %v379_v0 = vmul.f32 %v1485_v26, %v363_v60 }
 0x229   :  { %v1213_v1 = vpop.eup %1212  ;;  %v347_v2 = vadd.f32 1e-05, %v335_v57  ;;  %v406_v3 = vmax.f32 %v394_v5, 0.0  ;;  %v380_v4 = vmul.f32 %v1485_v26, %v364_v61 }
 0x22a   :  { %v1215_v7 = vpop.eup %1214  ;;  %1120 = vmatmul.mubr.msk.f32.vlgmr.msra.gmra.mrb[12].mxu0 %vm214_vm1, %v405_v62  ;;  %v395_v14 = vadd.f32 %v1491_v32, %v379_v0  ;;  %v365_v8 = vmul.f32 %v1213_v1, %v1429_v24 }
 0x22b   :  { %1224 = vrsqrt.f32 %v347_v2  ;;  %1122 = vmatprep.mubr.msk.f32.mxu0 %vm214_vm1, %v406_v3  ;;  %v396_v15 = vadd.f32 %v1491_v32, %v380_v4  ;;  %v366_v9 = vmul.f32 %v1215_v7, %v1431_v25 }
 0x22c   :  { %v407_v10 = vmax.f32 %v395_v14, 0.0  ;;  %v381_v11 = vmul.f32 %v1485_v26, %v365_v8 }
 0x22d   :  { %v1217_v12 = vpop.eup %1216  ;;  %v408_v13 = vmax.f32 %v396_v15, 0.0  ;;  %v382_v16 = vmul.f32 %v1485_v26, %v366_v9 }
 0x22e   :  { %v1219_v17 = vpop.eup %1218  ;;  %1123 = vmatmul.mubr.msk.f32.gmra.mrb[14].mxu0 %vm214_vm1, %v407_v10  ;;  %v397_v18 = vadd.f32 %v1491_v32, %v381_v11  ;;  %v367_v24 = vmul.f32 %v1217_v12, %v1440_v34 }
 0x22f   :  { %1125 = vmatprep.mubr.msk.f32.mxu1 %vm214_vm1, %v408_v13  ;;  %v398_v19 = vadd.f32 %v1491_v32, %v382_v16  ;;  %v368_v25 = vmul.f32 %v1219_v17, %v1442_v35 }
 0x230   :  { %v409_v20 = vmax.f32 %v397_v18, 0.0  ;;  %v383_v21 = vmul.f32 %v1485_v26, %v367_v24 }
 0x231   :  { %v1221_v22 = vpop.eup %1220  ;;  %v410_v23 = vmax.f32 %v398_v19, 0.0  ;;  %v384_v27 = vmul.f32 %v1485_v26, %v368_v25 }
 0x232   :  { %v1223_v28 = vpop.eup %1222  ;;  %1126 = vmatmul.mubr.msk.f32.vlgmr.msra.gmra.mrb[0].mxu1 %vm214_vm1, %v409_v20  ;;  %v399_v29 = vadd.f32 %v1491_v32, %v383_v21  ;;  %v369_v34 = vmul.f32 %v1221_v22, %v1451_v44 }
 0x233   :  { %1128 = vmatprep.mubr.msk.f32.mxu1 %vm214_vm1, %v410_v23  ;;  %v400_v30 = vadd.f32 %v1491_v32, %v384_v27  ;;  %v370_v35 = vmul.f32 %v1223_v28, %v1454_v45 }
 0x234   :  { %v411_v31 = vmax.f32 %v399_v29, 0.0  ;;  %v385_v33 = vmul.f32 %v1485_v26, %v369_v34 }
 0x235   :  { %v1225_v36 = vpop.eup %1224  ;;  %v412_v37 = vmax.f32 %v400_v30, 0.0  ;;  %v386_v38 = vmul.f32 %v1485_v26, %v370_v35 }
 0x236   :  { %1129 = vmatmul.mubr.msk.f32.gmra.mrb[2].mxu1 %vm214_vm1, %v411_v31  ;;  %v401_v39 = vadd.f32 %v1491_v32, %v385_v33  ;;  %v371_v40 = vmul.f32 %v1225_v36, %v1469_v54  ;;  %v997_v54 = vld [vmem:[%s1720_s4 + $0x3] ss:$0 sm:$0xff] }
 0x237   :  { %1131 = vmatprep.mubr.msk.f32.mxu1 %vm214_vm1, %v412_v37  ;;  %v402_v44 = vadd.f32 %v1491_v32, %v386_v38 }
 0x238   :  { %v413_v41 = vmax.f32 %v401_v39, 0.0  ;;  %v387_v45 = vmul.f32 %v1485_v26, %v371_v40 }
 0x239   :  { %v414_v42 = vmax.f32 %v402_v44, 0.0 }
 0x23a   :  { %1132 = vmatmul.mubr.msk.f32.gmra.mrb[4].mxu1 %vm214_vm1, %v413_v41  ;;  %v403_v43 = vadd.f32 %v1491_v32, %v387_v45 }
 0x23b   :  { %1134 = vmatprep.mubr.msk.f32.mxu1 %vm214_vm1, %v414_v42 }
 0x23c   :  { %v415_v46 = vmax.f32 %v403_v43, 0.0 }
 0x23e   :  { %1135 = vmatmul.mubr.msk.f32.gmra.mrb[6].mxu1 %vm214_vm1, %v415_v46 }
 0x2fd   :  { %v1121_v63 = vpop.f32.mrb[12].mxu0 }
 0x2fe   :  { %v532_v47 = vadd.f32 %v1121_v63, %v997_v54  ;;  %v526_v48 = vpop.f32.mrb[13].mxu0 }
 0x2ff   :  { %v527_v49 = vadd.f32 %v997_v54, %v526_v48 }
 0x300   :  { %v588_v26 = vsel %vm214_vm1, %v532_v47, 0.0 }
 0x301   :  { %589 = vadd.xlane.f32.xlu1 %v588_v26  ;;  %v1124_v50 = vpop.f32.mrb[14].mxu0  ;;  %v585_v52 = vsel %vm214_vm1, %v527_v49, 0.0 }
 0x302   :  { %v542_v32 = vadd.f32 %v1124_v50, %v997_v54  ;;  %v536_v51 = vpop.f32.mrb[15].mxu0  ;;  %586 = vadd.xlane.f32.xlu0 %v585_v52 }
 0x303   :  { %v537_v53 = vadd.f32 %v997_v54, %v536_v51 }
 0x304   :  { %v594_v55 = vsel %vm214_vm1, %v542_v32, 0.0 }
 0x305   :  { %v1127_v56 = vpop.f32.mrb[0].mxu1  ;;  %595 = vadd.xlane.f32.xlu1 %v594_v55  ;;  %v591_v58 = vsel %vm214_vm1, %v537_v53, 0.0 }
 0x306   :  { %v552_v6 = vadd.f32 %v1127_v56, %v997_v54  ;;  %v546_v59 = vpop.f32.mrb[1].mxu1  ;;  %592 = vadd.xlane.f32.xlu0 %v591_v58 }
 0x307   :  { %v547_v60 = vadd.f32 %v997_v54, %v546_v59 }
 0x308   :  { %v600_v57 = vsel %vm214_vm1, %v552_v6, 0.0 }
 0x309   :  { %v1130_v5 = vpop.f32.mrb[2].mxu1  ;;  %601 = vadd.xlane.f32.xlu1 %v600_v57  ;;  %v597_v61 = vsel %vm214_vm1, %v547_v60, 0.0 }
 0x30a   :  { %v562_v62 = vadd.f32 %v1130_v5, %v997_v54  ;;  %v556_v0 = vpop.f32.mrb[3].mxu1  ;;  %598 = vadd.xlane.f32.xlu0 %v597_v61 }
 0x30b   :  { %v557_v1 = vadd.f32 %v997_v54, %v556_v0 }
 0x30c   :  { %v606_v2 = vsel %vm214_vm1, %v562_v62, 0.0 }
 0x30d   :  { %v1133_v3 = vpop.f32.mrb[4].mxu1  ;;  %607 = vadd.xlane.f32.xlu1 %v606_v2  ;;  %v603_v4 = vsel %vm214_vm1, %v557_v1, 0.0 }
 0x30e   :  { %v1551_v7 = vadd.f32 %v1133_v3, %v997_v54  ;;  %v566_v14 = vpop.f32.mrb[5].mxu1  ;;  %604 = vadd.xlane.f32.xlu0 %v603_v4 }
 0x30f   :  { %v1553_v8 = vadd.f32 %v997_v54, %v566_v14 }
 0x310   :  { %v612_v15 = vsel %vm214_vm1, %v1551_v7, 0.0 }
 0x311   :  { %v1136_v9 = vpop.f32.mrb[6].mxu1  ;;  %613 = vadd.xlane.f32.xlu1 %v612_v15  ;;  %v609_v10 = vsel %vm214_vm1, %v1553_v8, 0.0 }
 0x312   :  { %v1559_v11 = vadd.f32 %v1136_v9, %v997_v54  ;;  %v576_v12 = vpop.f32.mrb[7].mxu1  ;;  %610 = vadd.xlane.f32.xlu0 %v609_v10 }
 0x313   :  { %v1561_v13 = vadd.f32 %v997_v54, %v576_v12  ;;  %v785_v12 = vld [vmem:[%s1719_s3] sm:$0xff] }
 0x314   :  { %v618_v16 = vsel %vm214_vm1, %v1559_v11, 0.0 }
 0x315   :  { %619 = vadd.xlane.f32.xlu1 %v618_v16  ;;  %v615_v17 = vsel %vm214_vm1, %v1561_v13, 0.0 }
 0x316   :  { %616 = vadd.xlane.f32.xlu0 %v615_v17  ;;  %v787_v17 = vld [vmem:[%s1719_s3 + $0x10] sm:$0xff] }
 0x38e   :  { %v590_v18 = vpop.xlane.xlu1 %589 }
 0x38f   :  { %v622_v24 = vmul.f32 0.03125, %v590_v18  ;;  %v587_v19 = vpop.xlane.xlu0 %586  ;;  %v788_v18 = vld [vmem:[%s1719_s3 + $0x18] sm:$0xff] }
 0x390   :  { %v621_v25 = vmul.f32 0.03125, %v587_v19 }
 0x391   :  { %v1567_v20 = vsub.f32 %v532_v47, %v622_v24  ;;  %v1191_v24 = vpack.c.bf16 %v788_v18, %v787_v17 }
 0x392   :  { %v1569_v21 = vsub.f32 %v527_v49, %v621_v25  ;;  %v596_v22 = vpop.xlane.xlu1 %595 }
 0x393   :  { %v624_v23 = vmul.f32 0.03125, %v596_v22  ;;  %v593_v27 = vpop.xlane.xlu0 %592  ;;  %v646_v28 = vmul.f32 %v1567_v20, %v1567_v20 }
 0x394   :  { %v623_v29 = vmul.f32 0.03125, %v593_v27  ;;  %v645_v34 = vmul.f32 %v1569_v21, %v1569_v21 }
 0x395   :  { %v1575_v30 = vsub.f32 %v542_v32, %v624_v23  ;;  %v660_v35 = vsel %vm214_vm1, %v646_v28, 0.0 }
 0x396   :  { %v1578_v31 = vsub.f32 %v537_v53, %v623_v29  ;;  %661 = vadd.xlane.f32.xlu1 %v660_v35  ;;  %v602_v33 = vpop.xlane.xlu1 %601  ;;  %v657_v36 = vsel %vm214_vm1, %v645_v34, 0.0 }
 0x397   :  { %v626_v37 = vmul.f32 0.03125, %v602_v33  ;;  %658 = vadd.xlane.f32.xlu0 %v657_v36  ;;  %v599_v38 = vpop.xlane.xlu0 %598  ;;  %v648_v39 = vmul.f32 %v1575_v30, %v1575_v30 }
 0x398   :  { %v625_v40 = vmul.f32 0.03125, %v599_v38  ;;  %v647_v44 = vmul.f32 %v1578_v31, %v1578_v31 }
 0x399   :  { %v1585_v41 = vsub.f32 %v552_v6, %v626_v37  ;;  %v666_v45 = vsel %vm214_vm1, %v648_v39, 0.0 }
 0x39a   :  { %v1588_v42 = vsub.f32 %v547_v60, %v625_v40  ;;  %667 = vadd.xlane.f32.xlu1 %v666_v45  ;;  %v608_v43 = vpop.xlane.xlu1 %607  ;;  %v663_v46 = vsel %vm214_vm1, %v647_v44, 0.0 }
 0x39b   :  { %v628_v54 = vmul.f32 0.03125, %v608_v43  ;;  %664 = vadd.xlane.f32.xlu0 %v663_v46  ;;  %v605_v63 = vpop.xlane.xlu0 %604  ;;  %v650_v47 = vmul.f32 %v1585_v41, %v1585_v41 }
 0x39c   :  { %v627_v48 = vmul.f32 0.03125, %v605_v63  ;;  %v649_v49 = vmul.f32 %v1588_v42, %v1588_v42 }
 0x39d   :  { %v1595_v26 = vsub.f32 %v562_v62, %v628_v54  ;;  %v672_v50 = vsel %vm214_vm1, %v650_v47, 0.0 }
 0x39e   :  { %v1598_v52 = vsub.f32 %v557_v1, %v627_v48  ;;  %673 = vadd.xlane.f32.xlu1 %v672_v50  ;;  %v614_v32 = vpop.xlane.xlu1 %613  ;;  %v669_v51 = vsel %vm214_vm1, %v649_v49, 0.0  ;;  %v1646_v49 = vld [vmem:[%s1720_s4 + $0x4] ss:$0 sm:$0xff] }
 0x39f   :  { %v630_v53 = vmul.f32 0.03125, %v614_v32  ;;  %670 = vadd.xlane.f32.xlu0 %v669_v51  ;;  %v611_v55 = vpop.xlane.xlu0 %610  ;;  %v652_v56 = vmul.f32 %v1595_v26, %v1595_v26 }
 0x3a0   :  { %v629_v58 = vmul.f32 0.03125, %v611_v55  ;;  %v651_v6 = vmul.f32 %v1598_v52, %v1598_v52 }
 0x3a1   :  { %v1606_v59 = vsub.f32 %v1551_v7, %v630_v53  ;;  %v678_v60 = vsel %vm214_vm1, %v652_v56, 0.0  ;;  %v1652_v56 = vld [vmem:[%s1720_s4 + $0x5] ss:$0 sm:$0xff] }
 0x3a2   :  { %v1610_v57 = vsub.f32 %v1553_v8, %v629_v58  ;;  %679 = vadd.xlane.f32.xlu1 %v678_v60  ;;  %v620_v5 = vpop.xlane.xlu1 %619  ;;  %v675_v61 = vsel %vm214_vm1, %v651_v6, 0.0 }
 0x3a3   :  { %v632_v62 = vmul.f32 0.03125, %v620_v5  ;;  %676 = vadd.xlane.f32.xlu0 %v675_v61  ;;  %v617_v0 = vpop.xlane.xlu0 %616  ;;  %v654_v1 = vmul.f32 %v1606_v59, %v1606_v59 }
 0x3a4   :  { %v631_v2 = vmul.f32 0.03125, %v617_v0  ;;  %v653_v3 = vmul.f32 %v1610_v57, %v1610_v57 }
 0x3a5   :  { %v1618_v4 = vsub.f32 %v1559_v11, %v632_v62  ;;  %v684_v7 = vsel %vm214_vm1, %v654_v1, 0.0 }
 0x3a6   :  { %v1622_v14 = vsub.f32 %v1561_v13, %v631_v2  ;;  %685 = vadd.xlane.f32.xlu1 %v684_v7  ;;  %v681_v8 = vsel %vm214_vm1, %v653_v3, 0.0  ;;  %v786_v13 = vld [vmem:[%s1719_s3 + $0x8] sm:$0xff] }
 0x3a7   :  { %682 = vadd.xlane.f32.xlu0 %v681_v8  ;;  %v656_v15 = vmul.f32 %v1618_v4, %v1618_v4  ;;  %v1187_v16 = vpack.c.bf16 %v786_v13, %v785_v12 }
 0x3a8   :  { %v655_v9 = vmul.f32 %v1622_v14, %v1622_v14 }
 0x3a9   :  { %v690_v10 = vsel %vm214_vm1, %v656_v15, 0.0  ;;  %1188 = vmatprep.subr.bf16.mxu1 %v1187_v16 }
 0x3aa   :  { %691 = vadd.xlane.f32.xlu1 %v690_v10  ;;  %v687_v11 = vsel %vm214_vm1, %v655_v9, 0.0  ;;  %1190 = vmatpush3.bf16.msra.mxu1 %v1187_v16 }
 0x3ab   :  { %688 = vadd.xlane.f32.xlu0 %v687_v11  ;;  %1192 = vmatprep.subr.bf16.mxu1 %v1191_v24 }
 0x3ae   :  { %1194 = vmatpush3.bf16.msra.mxu1 %v1191_v24 }
 0x423   :  { %v662_v19 = vpop.xlane.xlu1 %661 }
 0x424   :  { %v694_v25 = vmul.f32 0.03125, %v662_v19  ;;  %v659_v22 = vpop.xlane.xlu0 %658 }
 0x425   :  { %v693_v23 = vmul.f32 0.03125, %v659_v22 }
 0x426   :  { %v706_v27 = vadd.f32 1e-05, %v694_v25 }
 0x427   :  { %v705_v28 = vadd.f32 1e-05, %v693_v23  ;;  %v668_v29 = vpop.xlane.xlu1 %667 }
 0x428   :  { %1226 = vrsqrt.f32 %v706_v27  ;;  %v696_v34 = vmul.f32 0.03125, %v668_v29  ;;  %v665_v35 = vpop.xlane.xlu0 %664 }
 0x429   :  { %1228 = vrsqrt.f32 %v705_v28  ;;  %v695_v33 = vmul.f32 0.03125, %v665_v35 }
 0x42a   :  { %v708_v36 = vadd.f32 1e-05, %v696_v34 }
 0x42b   :  { %v707_v37 = vadd.f32 1e-05, %v695_v33  ;;  %v674_v38 = vpop.xlane.xlu1 %673 }
 0x42c   :  { %1230 = vrsqrt.f32 %v708_v36  ;;  %v698_v39 = vmul.f32 0.03125, %v674_v38  ;;  %v671_v40 = vpop.xlane.xlu0 %670 }
 0x42d   :  { %1232 = vrsqrt.f32 %v707_v37  ;;  %v697_v44 = vmul.f32 0.03125, %v671_v40 }
 0x42e   :  { %v710_v45 = vadd.f32 1e-05, %v698_v39 }
 0x42f   :  { %v709_v43 = vadd.f32 1e-05, %v697_v44  ;;  %v680_v46 = vpop.xlane.xlu1 %679 }
 0x430   :  { %1234 = vrsqrt.f32 %v710_v45  ;;  %v700_v54 = vmul.f32 0.03125, %v680_v46  ;;  %v677_v63 = vpop.xlane.xlu0 %676 }
 0x431   :  { %1236 = vrsqrt.f32 %v709_v43  ;;  %v699_v47 = vmul.f32 0.03125, %v677_v63 }
 0x432   :  { %v1227_v48 = vpop.eup %1226  ;;  %v712_v50 = vadd.f32 1e-05, %v700_v54 }
 0x433   :  { %v1229_v32 = vpop.eup %1228  ;;  %v730_v51 = vmul.f32 %v1227_v48, %v1567_v20  ;;  %v711_v53 = vadd.f32 1e-05, %v699_v47  ;;  %v686_v55 = vpop.xlane.xlu1 %685 }
 0x434   :  { %1238 = vrsqrt.f32 %v712_v50  ;;  %v702_v58 = vmul.f32 0.03125, %v686_v55  ;;  %v683_v6 = vpop.xlane.xlu0 %682  ;;  %v729_v60 = vmul.f32 %v1229_v32, %v1569_v21 }
 0x435   :  { %v746_v5 = vmul.f32 %v1646_v49, %v730_v51  ;;  %1240 = vrsqrt.f32 %v711_v53  ;;  %v701_v61 = vmul.f32 0.03125, %v683_v6 }
 0x436   :  { %v1231_v62 = vpop.eup %1230  ;;  %v714_v0 = vadd.f32 1e-05, %v702_v58  ;;  %v745_v20 = vmul.f32 %v1646_v49, %v729_v60 }
 0x437   :  { %v1233_v1 = vpop.eup %1232  ;;  %v762_v2 = vadd.f32 %v1652_v56, %v746_v5  ;;  %v713_v3 = vadd.f32 1e-05, %v701_v61  ;;  %v692_v7 = vpop.xlane.xlu1 %691  ;;  %v732_v8 = vmul.f32 %v1231_v62, %v1575_v30 }
 0x438   :  { %1242 = vrsqrt.f32 %v714_v0  ;;  %v704_v15 = vmul.f32 0.03125, %v692_v7  ;;  %v689_v9 = vpop.xlane.xlu0 %688  ;;  %v761_v21 = vadd.f32 %v1652_v56, %v745_v20  ;;  %v731_v10 = vmul.f32 %v1233_v1, %v1578_v31  ;;  %v1012_v0 = vld [vmem:[%s1720_s4 + $0x6] ss:$0 sm:$0xff]  ;;  %s1274_s4 = smov [#allocation2]  }
 0x439   :  { %1244 = vrsqrt.f32 %v713_v3  ;;  %v703_v11 = vmul.f32 0.03125, %v689_v9  ;;  %v748_v12 = vmul.f32 %v1646_v49, %v732_v8  ;;  %v774_v19 = vmax.f32 %v762_v2, 0.0  ;;  %s971_s8 = sshll.u32 %s1274_s4, 4  ;;  %s972_s8 = int_to_ptr.vmem [resolvable:$true] %s971_s8 }
 0x43a   :  { %v1235_v13 = vpop.eup %1234  ;;  %v716_v16 = vadd.f32 1e-05, %v704_v15  ;;  %v773_v17 = vmax.f32 %v761_v21, 0.0  ;;  %v747_v18 = vmul.f32 %v1646_v49, %v731_v10  ;;  %s1250_s0 = scalar_lea.vmem %s972_s8, 1536  ;;  %p1255_p1 = scmp.lt.s32.totalorder %s972_s8, %s972_s8 }
 0x43b   :  { %v1237_v24 = vpop.eup %1236  ;;  %v715_v25 = vadd.f32 1e-05, %v703_v11  ;;  %v764_v30 = vadd.f32 %v1652_v56, %v748_v12  ;;  %v734_v22 = vmul.f32 %v1235_v13, %v1585_v41  ;;  %p1251_p0 = scmp.ne.s32.totalorder %s972_s8, %s1250_s0  ;;  %p1256_p2 = scmp.lt.s32.totalorder %s1250_s0, %s1250_s0 }
 0x43c   :  { %1246 = vrsqrt.f32 %v716_v16  ;;  %1145 = vmatprep.mubr.msk.f32.mxu1 %vm214_vm1, %v773_v17  ;;  %v763_v31 = vadd.f32 %v1652_v56, %v747_v18  ;;  %v733_v23 = vmul.f32 %v1237_v24, %v1588_v42 }
 0x43d   :  { %1248 = vrsqrt.f32 %v715_v25  ;;  %1146 = vmatmul.mubr.msk.f32.vlgmr.msra.gmra.mrb[8].mxu1 %vm214_vm1, %v774_v19  ;;  %v750_v27 = vmul.f32 %v1646_v49, %v734_v22  ;;  %v776_v33 = vmax.f32 %v764_v30, 0.0  ;;  %p1257_p3 = por %p1256_p2, %p1255_p1 }
 0x43e   :  { %v1239_v28 = vpop.eup %1238  ;;  %v775_v29 = vmax.f32 %v763_v31, 0.0  ;;  %v749_v34 = vmul.f32 %v1646_v49, %v733_v23 }
 0x43f   :  { %v1241_v35 = vpop.eup %1240  ;;  %v766_v41 = vadd.f32 %v1652_v56, %v750_v27  ;;  %v736_v36 = vmul.f32 %v1239_v28, %v1595_v26  ;;  %p1258_p4 = pnand %p1257_p3, %p1251_p0 }
 0x440   :  { %1148 = vmatprep.mubr.msk.f32.mxu1 %vm214_vm1, %v775_v29  ;;  %v765_v37 = vadd.f32 %v1652_v56, %v749_v34  ;;  %v735_v42 = vmul.f32 %v1241_v35, %v1598_v52 }
 0x441   :  { %1149 = vmatmul.mubr.msk.f32.gmra.mrb[10].mxu1 %vm214_vm1, %v776_v33  ;;  %v752_v38 = vmul.f32 %v1646_v49, %v736_v36  ;;  %v778_v43 = vmax.f32 %v766_v41, 0.0 }
 0x442   :  { %v1243_v39 = vpop.eup %1242  ;;  %v777_v40 = vmax.f32 %v765_v37, 0.0  ;;  %v751_v44 = vmul.f32 %v1646_v49, %v735_v42 }
 0x443   :  { %v1245_v45 = vpop.eup %1244  ;;  %v768_v46 = vadd.f32 %v1652_v56, %v752_v38  ;;  %v738_v26 = vmul.f32 %v1243_v39, %v1606_v59 }
 0x444   :  { %1151 = vmatprep.mubr.msk.f32.mxu1 %vm214_vm1, %v777_v40  ;;  %v767_v54 = vadd.f32 %v1652_v56, %v751_v44  ;;  %v737_v52 = vmul.f32 %v1245_v45, %v1610_v57 }
 0x445   :  { %1152 = vmatmul.mubr.msk.f32.gmra.mrb[12].mxu1 %vm214_vm1, %v778_v43  ;;  %v754_v63 = vmul.f32 %v1646_v49, %v738_v26  ;;  %v780_v53 = vmax.f32 %v768_v46, 0.0 }
 0x446   :  { %v1247_v47 = vpop.eup %1246  ;;  %v779_v48 = vmax.f32 %v767_v54, 0.0  ;;  %v753_v50 = vmul.f32 %v1646_v49, %v737_v52 }
 0x447   :  { %v1249_v32 = vpop.eup %1248  ;;  %v740_v51 = vmul.f32 %v1247_v47, %v1618_v4  ;;  %v770_v59 = vadd.f32 %v1652_v56, %v754_v63 }
 0x448   :  { %v739_v55 = vmul.f32 %v1249_v32, %v1622_v14  ;;  %1154 = vmatprep.mubr.msk.f32.mxu1 %vm214_vm1, %v779_v48  ;;  %v769_v57 = vadd.f32 %v1652_v56, %v753_v50 }
 0x449   :  { %1155 = vmatmul.mubr.msk.f32.gmra.mrb[14].mxu1 %vm214_vm1, %v780_v53  ;;  %v756_v58 = vmul.f32 %v1646_v49, %v740_v51  ;;  %v782_v5 = vmax.f32 %v770_v59, 0.0 }
 0x44a   :  { %v781_v6 = vmax.f32 %v769_v57, 0.0  ;;  %v755_v60 = vmul.f32 %v1646_v49, %v739_v55 }
 0x44b   :  { %v772_v61 = vadd.f32 %v1652_v56, %v756_v58 }
 0x44c   :  { %1157 = vmatprep.mubr.msk.f32.mxu1 %vm214_vm1, %v781_v6  ;;  %v771_v4 = vadd.f32 %v1652_v56, %v755_v60 }
 0x44d   :  { %1158 = vmatmul.mubr.msk.f32.gmra.mrb[16].mxu1 %vm214_vm1, %v782_v5  ;;  %v784_v62 = vmax.f32 %v772_v61, 0.0 }
 0x44e   :  { %v783_v14 = vmax.f32 %v771_v4, 0.0 }
 0x450   :  { %1160 = vmatprep.mubr.msk.f32.mxu1 %vm214_vm1, %v783_v14 }
 0x451   :  { %1161 = vmatmul.mubr.msk.f32.gmra.mrb[18].mxu1 %vm214_vm1, %v784_v62 }
 0x510   :  { %v1147_v49 = vpop.f32.mrb[8].mxu1 }
 0x511   :  { %v901_v20 = vadd.f32 %v1147_v49, %v1012_v0  ;;  %v895_v1 = vpop.f32.mrb[9].mxu1 }
 0x512   :  { %v896_v2 = vadd.f32 %v1012_v0, %v895_v1 }
 0x513   :  { %955 = vst [vmem:[#allocation2 + $0x8] sm:$0xff] %v901_v20 }
 0x514   :  { %954 = vst [vmem:[#allocation2] sm:$0xff] %v896_v2  ;;  %v1150_v3 = vpop.f32.mrb[10].mxu1 }
 0x515   :  { %v911_v56 = vadd.f32 %v1150_v3, %v1012_v0  ;;  %v905_v7 = vpop.f32.mrb[11].mxu1 }
 0x516   :  { %v906_v8 = vadd.f32 %v1012_v0, %v905_v7 }
 0x517   :  { %957 = vst [vmem:[#allocation2 + $0x18] sm:$0xff] %v911_v56 }
 0x518   :  { %956 = vst [vmem:[#allocation2 + $0x10] sm:$0xff] %v906_v8  ;;  %v1153_v15 = vpop.f32.mrb[12].mxu1 }
 0x519   :  { %v921_v9 = vadd.f32 %v1153_v15, %v1012_v0  ;;  %v915_v21 = vpop.f32.mrb[13].mxu1 }
 0x51a   :  { %v916_v10 = vadd.f32 %v1012_v0, %v915_v21 }
 0x51b   :  { %959 = vst [vmem:[#allocation2 + $0x28] sm:$0xff] %v921_v9 }
 0x51c   :  { %958 = vst [vmem:[#allocation2 + $0x20] sm:$0xff] %v916_v10  ;;  %v1156_v11 = vpop.f32.mrb[14].mxu1 }
 0x51d   :  { %v931_v12 = vadd.f32 %v1156_v11, %v1012_v0  ;;  %v925_v13 = vpop.f32.mrb[15].mxu1 }
 0x51e   :  { %v926_v16 = vadd.f32 %v1012_v0, %v925_v13 }
 0x51f   :  { %961 = vst [vmem:[#allocation2 + $0x38] sm:$0xff] %v931_v12 }
 0x520   :  { %960 = vst [vmem:[#allocation2 + $0x30] sm:$0xff] %v926_v16  ;;  %v1159_v17 = vpop.f32.mrb[16].mxu1 }
 0x521   :  { %v941_v18 = vadd.f32 %v1159_v17, %v1012_v0  ;;  %v935_v24 = vpop.f32.mrb[17].mxu1 }
 0x522   :  { %v936_v19 = vadd.f32 %v1012_v0, %v935_v24 }
 0x523   :  { %963 = vst [vmem:[#allocation2 + $0x48] sm:$0xff] %v941_v18 }
 0x524   :  { %962 = vst [vmem:[#allocation2 + $0x40] sm:$0xff] %v936_v19  ;;  %v1162_v25 = vpop.f32.mrb[18].mxu1 }
 0x525   :  { %v951_v30 = vadd.f32 %v1162_v25, %v1012_v0  ;;  %v945_v22 = vpop.f32.mrb[19].mxu1 }
 0x526   :  { %v946_v31 = vadd.f32 %v1012_v0, %v945_v22 }
 0x527   :  { %965 = vst [vmem:[#allocation2 + $0x58] sm:$0xff] %v951_v30 }
 0x528   :  { %964 = vst [vmem:[#allocation2 + $0x50] sm:$0xff] %v946_v31 }
 0x529   :  { %1261 = shalt.err (!%p1258_p4)
}
 0x52a   :  { %s1262_s11 = scalar_lea.hbm %s1721_s5, 1536 }
 0x52b   :  { %p1263_p5 = scmp.ne.s32.totalorder %s1721_s5, %s1262_s11  ;;  %p1266_p6 = scmp.lt.u32.totalorder %s1262_s11, %s1721_s5 }
 0x52d   :  { %p1268_p7 = pnand %p1266_p6, %p1263_p5 }
 0x52f   :  { %1271 = shalt.err (!%p1268_p7)
}
 0x530   :  { %s1275_s2 = smov 128   ;;  %s1276_s15 = smov 8  }
 0x531   :  { %977 = dma.vmem_to_hbm [thread:$0]  %s972_s8, 1536, %s1721_s5, [#allocation3], %s1275_s2, %s1275_s2, %s1276_s15  }
 0x532   :  { %1272 = dma.done.wait [#allocation3], 1536  }
 0x533   :  { %1273 = vsyncadd [#allocation3], 4294965760 }
 0x534   :  { %981 = vsyncpa [#allocation3], 1 }

</bundles_post_ra>
